<compile_context>
chip_gen: v6e
topology: v6e:2x2x1
jax: 0.10.0
libtpu: 0.0.40
codegen_flags: <defaults>
</compile_context>

<pallas_src>
import functools

import jax
import jax.numpy as jnp
from jax.experimental import pallas as pl
from jax.experimental.pallas import tpu as pltpu

BN_EPS = 1e-5
_LANE = 128
_SUBLANE = 16  # bf16 sublane packing; also satisfies the f32 (8, 128) rule


# ---------------------------------------------------------------------------
# Helpers
# ---------------------------------------------------------------------------
def _round_up(n, m):
    return ((n + m - 1) // m) * m


def _pad2d(a, rows, cols):
    return jnp.pad(a, ((0, rows - a.shape[0]), (0, cols - a.shape[1])))


def _full_spec(shape):
    # single grid step, whole (already padded) array as one block
    return pl.BlockSpec(shape, lambda: (0,) * len(shape))


@functools.lru_cache(maxsize=1)
def _vmem_capacity_bytes():
    try:
        return int(pltpu.get_tpu_info().vmem_capacity_bytes)
    except Exception:
        return 64 * 1024 * 1024  # conservative v7x per-TC floor


# ---------------------------------------------------------------------------
# Fused Pallas kernel (all layers, unrolled at trace time)
# ---------------------------------------------------------------------------
def _make_fused_mlp_kernel(num_layers, n_true):
    num_hidden = num_layers - 1
    inv_n = 1.0 / float(n_true)

    def kernel(*refs):
        x_ref = refs[0]
        w_refs = refs[1:1 + num_layers]
        g_refs = refs[1 + num_layers:1 + num_layers + num_hidden]
        be_refs = refs[1 + num_layers + num_hidden:1 + num_layers + 2 * num_hidden]
        b_ref = refs[1 + num_layers + 2 * num_hidden]
        o_ref = refs[2 + num_layers + 2 * num_hidden]

        h = x_ref[...]                                  # bf16 (N_pad, D_in_pad)

        if num_hidden:
            n_pad = x_ref.shape[0]
            h_pad = w_refs[0].shape[1]
            # Row-validity mask, built ONCE at full (N_pad, H_pad) width and
            # hoisted out of the loop (JAX does not CSE broadcast_in_dim).
            mask = (jax.lax.broadcasted_iota(jnp.int32, (n_pad, h_pad), 0)
                    < n_true).astype(jnp.float32)

        for i in range(num_hidden):
            # Linear — bias omitted: exactly cancelled by BN mean subtraction.
            y = jnp.dot(h, w_refs[i][...], preferred_element_type=jnp.float32)
            # One-pass batch stats over the TRUE batch only: padded rows of h
            # are zero (and there is no bias), so they contribute 0 to sums.
            # NOTE: E[y^2]-E[y]^2 is cancellation-prone for |mean|>>std; OK at
            # the accepted bf16-matmul tolerance (~5e-2).
            mean = jnp.sum(y, axis=0, keepdims=True) * inv_n
            var = jnp.maximum(
                jnp.sum(y * y, axis=0, keepdims=True) * inv_n - mean * mean, 0.0)
            # BN normalize + affine folded into one FMA.
            scale = g_refs[i][...] * jax.lax.rsqrt(var + BN_EPS)
            shift = be_refs[i][...] - mean * scale
            # ReLU + padded-row re-zero, cast to bf16 IN the epilogue so the
            # resident activation is bf16 (no extra cast before the next dot).
            h = (jnp.maximum(y * scale + shift, 0.0) * mask).astype(jnp.bfloat16)

        # Final Linear (bias kept, no BN / ReLU). Lane-dense (padded) store.
        o_ref[...] = jnp.dot(h, w_refs[-1][...],
                             preferred_element_type=jnp.float32) + b_ref[...]

    return kernel


# ---------------------------------------------------------------------------
# Wrapper: pad to (sublane, 128) tiling, bf16 operands, single pallas_call
# ---------------------------------------------------------------------------
@jax.jit
def mlp_forward(params, x):
    """Fused Pallas forward of the whole MLP. x: (N, input_dim) float32."""
    num_layers = len(params["linears"])
    num_hidden = num_layers - 1
    n, d_in = x.shape
    d_out = params["linears"][-1][0].shape[1]
    h_dim = params["linears"][0][0].shape[1] if num_hidden else d_out

    n_pad = max(_round_up(n, _SUBLANE), _SUBLANE)
    d_in_pad = _round_up(d_in, _LANE)
    d_out_pad = _round_up(d_out, _LANE)
    h_pad = _round_up(h_dim, _LANE)

    # Pad operands to lane/sublane-dense shapes; x and weights pre-cast bf16.
    x_p = _pad2d(x, n_pad, d_in_pad).astype(jnp.bfloat16)
    w_p = [
        _pad2d(w, _round_up(w.shape[0], _LANE),
               _round_up(w.shape[1], _LANE)).astype(jnp.bfloat16)
        for (w, _) in params["linears"]
    ]
    g_p = [_pad2d(g, 1, _round_up(g.shape[1], _LANE)) for (g, _) in params["bns"]]
    be_p = [_pad2d(b, 1, _round_up(b.shape[1], _LANE)) for (_, b) in params["bns"]]
    b_last = _pad2d(params["linears"][-1][1].astype(jnp.float32), 1, d_out_pad)

    inputs = [x_p, *w_p, *g_p, *be_p, b_last]

    # VMEM budget from the actual footprint (double-buffered I/O + f32 y +
    # bf16 h), clamped against the physical per-core capacity with headroom
    # (v7x: 64 MiB/TC, v5e/v6e: 128 MiB). Never hard-code 32 MiB.
    in_bytes = sum(int(a.size) * a.dtype.itemsize for a in inputs)
    out_bytes = n_pad * d_out_pad * 4
    inter_bytes = n_pad * max(h_pad, d_in_pad, d_out_pad) * (4 + 4 + 2)
    vmem_need = 2 * (in_bytes + out_bytes) + inter_bytes + (2 << 20)
    vmem_limit = int(min(max(vmem_need, 8 << 20),
                         int(0.8 * _vmem_capacity_bytes())))

    # Advisory cost estimate for XLA's scheduler.
    flops = 2 * n_pad * sum(int(w.shape[0]) * int(w.shape[1]) for w in w_p)
    bytes_accessed = in_bytes + out_bytes
    transcendentals = num_hidden * h_pad

    out = pl.pallas_call(
        _make_fused_mlp_kernel(num_layers, n),
        out_shape=jax.ShapeDtypeStruct((n_pad, d_out_pad), jnp.float32),
        in_specs=[_full_spec(a.shape) for a in inputs],
        out_specs=_full_spec((n_pad, d_out_pad)),
        compiler_params=pltpu.CompilerParams(vmem_limit_bytes=vmem_limit),
        cost_estimate=pl.CostEstimate(
            flops=int(flops),
            transcendentals=int(transcendentals),
            bytes_accessed=int(bytes_accessed)),
    )(*inputs)
    return out[:n, :d_out]


# ---------------------------------------------------------------------------
# MLP parameter construction (PyTorch-default init) + pure-JAX f32 reference
# ---------------------------------------------------------------------------
def init_mlp_params(key, input_dim, hidden_dim, output_dim, num_layers):
    if num_layers < 1:
        raise ValueError("number of layers should be positive!")
    params = {"linears": [], "bns": []}
    dims = (
        [(input_dim, output_dim)]
        if num_layers == 1
        else [(input_dim, hidden_dim)]
        + [(hidden_dim, hidden_dim)] * (num_layers - 2)
        + [(hidden_dim, output_dim)]
    )
    for (d_in, d_out) in dims:
        key, kw, kb = jax.random.split(key, 3)
        bound = 1.0 / jnp.sqrt(d_in)
        # stored as (in, out) = PyTorch weight.T
        w = jax.random.uniform(kw, (d_in, d_out), jnp.float32, -bound, bound)
        b = jax.random.uniform(kb, (1, d_out), jnp.float32, -bound, bound)
        params["linears"].append((w, b))
    for _ in range(max(num_layers - 1, 0)):
        params["bns"].append((jnp.ones((1, hidden_dim), jnp.float32),
                              jnp.zeros((1, hidden_dim), jnp.float32)))
    return params


def mlp_reference(params, x):
    """Faithful f32 reference of the PyTorch forward (training-mode BN)."""
    num_layers = len(params["linears"])
    if num_layers == 1:
        w, b = params["linears"][0]
        return x @ w + b
    h = x
    for i in range(num_layers - 1):
        w, b = params["linears"][i]
        gamma, beta = params["bns"][i]
        y = h @ w + b
        mean = jnp.mean(y, axis=0, keepdims=True)
        var = jnp.mean((y - mean) ** 2, axis=0, keepdims=True)
        y = (y - mean) / jnp.sqrt(var + BN_EPS) * gamma + beta
        h = jnp.maximum(y, 0.0)
    w, b = params["linears"][-1]
    return h @ w + b


if __name__ == "__main__":
    # Small shapes consistent with the module: x is (num_nodes, input_dim).
    # N=10 deliberately exercises the row-padding/masking path (pads to 16).
    N, INPUT_DIM, HIDDEN_DIM, OUTPUT_DIM, NUM_LAYERS = 10, 16, 32, 8, 3

    key = jax.random.PRNGKey(0)
    key, kx = jax.random.split(key)
    x = jax.random.normal(kx, (N, INPUT_DIM), jnp.float32)

    # Multi-layer path (Linear -> BN -> ReLU, ..., Linear).
    params = init_mlp_params(key, INPUT_DIM, HIDDEN_DIM, OUTPUT_DIM, NUM_LAYERS)
    out = jax.block_until_ready(mlp_forward(params, x))
    ref = mlp_reference(params, x)
    assert out.shape == (N, OUTPUT_DIM)
    assert jnp.allclose(out, ref, atol=5e-2, rtol=5e-2), "mismatch (multi-layer)"

    # Single-layer path (pure Linear).
    params1 = init_mlp_params(jax.random.PRNGKey(1), INPUT_DIM, HIDDEN_DIM,
                              OUTPUT_DIM, 1)
    out1 = jax.block_until_ready(mlp_forward(params1, x))
    ref1 = mlp_reference(params1, x)
    assert out1.shape == (N, OUTPUT_DIM)
    assert jnp.allclose(out1, ref1, atol=5e-2, rtol=5e-2), "mismatch (1-layer)"

    print("KERNEL_OK")
</pallas_src>

<mosaic_0001>
module attributes {stable_mosaic.version = 11 : i64} {
  func.func @kernel(%arg0: memref<16x128xbf16, #tpu.memory_space<vmem>>, %arg1: memref<128x128xbf16, #tpu.memory_space<vmem>>, %arg2: memref<128x128xbf16, #tpu.memory_space<vmem>>, %arg3: memref<128x128xbf16, #tpu.memory_space<vmem>>, %arg4: memref<1x128xf32, #tpu.memory_space<vmem>>, %arg5: memref<1x128xf32, #tpu.memory_space<vmem>>, %arg6: memref<1x128xf32, #tpu.memory_space<vmem>>, %arg7: memref<1x128xf32, #tpu.memory_space<vmem>>, %arg8: memref<1x128xf32, #tpu.memory_space<vmem>>, %arg9: memref<16x128xf32, #tpu.memory_space<vmem>>) attributes {dimension_semantics = [], scalar_prefetch = 0 : i64, scratch_operands = 0 : i64, tpu.core_type = #tpu.core_type<tc>} {
    %c0 = arith.constant 0 : index
    %c0_0 = arith.constant 0 : index
    %0 = vector.load %arg0[%c0, %c0_0] : memref<16x128xbf16, #tpu.memory_space<vmem>>, vector<16x128xbf16>
    %1 = tpu.iota {dimensions = array<i32: 0>} : vector<16x128xi32>
    %c10_i32 = arith.constant 10 : i32
    %2 = vector.broadcast %c10_i32 : i32 to vector<16x128xi32>
    %3 = arith.cmpi slt, %1, %2 : vector<16x128xi32>
    %4 = arith.extui %3 : vector<16x128xi1> to vector<16x128xi32>
    %5 = arith.sitofp %4 : vector<16x128xi32> to vector<16x128xf32>
    %c0_1 = arith.constant 0 : index
    %c0_2 = arith.constant 0 : index
    %6 = vector.load %arg1[%c0_1, %c0_2] : memref<128x128xbf16, #tpu.memory_space<vmem>>, vector<128x128xbf16>
    %cst = arith.constant dense<0.000000e+00> : vector<16x128xf32>
    %7 = tpu.matmul %0, %6, %cst {dimension_numbers = #tpu.dot_dimension_numbers<[1], [0], [0], [1], [0, 0, 1, 1], [], []>} : vector<16x128xbf16>, vector<128x128xbf16>, vector<16x128xf32> -> vector<16x128xf32>
    %cst_3 = arith.constant dense<0.000000e+00> : vector<128xf32>
    %8 = vector.multi_reduction <add>, %7, %cst_3 [0] : vector<16x128xf32> to vector<128xf32>
    %9 = vector.shape_cast %8 : vector<128xf32> to vector<1x128xf32>
    %cst_4 = arith.constant 1.000000e-01 : f32
    %10 = vector.broadcast %cst_4 : f32 to vector<1x128xf32>
    %11 = arith.mulf %9, %10 : vector<1x128xf32>
    %12 = arith.mulf %7, %7 : vector<16x128xf32>
    %cst_5 = arith.constant dense<0.000000e+00> : vector<128xf32>
    %13 = vector.multi_reduction <add>, %12, %cst_5 [0] : vector<16x128xf32> to vector<128xf32>
    %14 = vector.shape_cast %13 : vector<128xf32> to vector<1x128xf32>
    %cst_6 = arith.constant 1.000000e-01 : f32
    %15 = vector.broadcast %cst_6 : f32 to vector<1x128xf32>
    %16 = arith.mulf %14, %15 : vector<1x128xf32>
    %17 = arith.mulf %11, %11 : vector<1x128xf32>
    %18 = arith.subf %16, %17 : vector<1x128xf32>
    %cst_7 = arith.constant 0.000000e+00 : f32
    %19 = vector.broadcast %cst_7 : f32 to vector<1x128xf32>
    %20 = arith.maximumf %18, %19 : vector<1x128xf32>
    %c0_8 = arith.constant 0 : index
    %c0_9 = arith.constant 0 : index
    %21 = vector.load %arg4[%c0_8, %c0_9] : memref<1x128xf32, #tpu.memory_space<vmem>>, vector<1x128xf32>
    %cst_10 = arith.constant 9.99999974E-6 : f32
    %22 = vector.broadcast %cst_10 : f32 to vector<1x128xf32>
    %23 = arith.addf %20, %22 : vector<1x128xf32>
    %24 = math.rsqrt %23 : vector<1x128xf32>
    %25 = arith.mulf %21, %24 : vector<1x128xf32>
    %c0_11 = arith.constant 0 : index
    %c0_12 = arith.constant 0 : index
    %26 = vector.load %arg6[%c0_11, %c0_12] : memref<1x128xf32, #tpu.memory_space<vmem>>, vector<1x128xf32>
    %27 = arith.mulf %11, %25 : vector<1x128xf32>
    %28 = arith.subf %26, %27 : vector<1x128xf32>
    %29 = vector.broadcast %25 : vector<1x128xf32> to vector<16x128xf32>
    %30 = arith.mulf %7, %29 : vector<16x128xf32>
    %31 = vector.broadcast %28 : vector<1x128xf32> to vector<16x128xf32>
    %32 = arith.addf %30, %31 : vector<16x128xf32>
    %cst_13 = arith.constant 0.000000e+00 : f32
    %33 = vector.broadcast %cst_13 : f32 to vector<16x128xf32>
    %34 = arith.maximumf %32, %33 : vector<16x128xf32>
    %35 = arith.mulf %34, %5 : vector<16x128xf32>
    %36 = arith.truncf %35 : vector<16x128xf32> to vector<16x128xbf16>
    %c0_14 = arith.constant 0 : index
    %c0_15 = arith.constant 0 : index
    %37 = vector.load %arg2[%c0_14, %c0_15] : memref<128x128xbf16, #tpu.memory_space<vmem>>, vector<128x128xbf16>
    %cst_16 = arith.constant dense<0.000000e+00> : vector<16x128xf32>
    %38 = tpu.matmul %36, %37, %cst_16 {dimension_numbers = #tpu.dot_dimension_numbers<[1], [0], [0], [1], [0, 0, 1, 1], [], []>} : vector<16x128xbf16>, vector<128x128xbf16>, vector<16x128xf32> -> vector<16x128xf32>
    %cst_17 = arith.constant dense<0.000000e+00> : vector<128xf32>
    %39 = vector.multi_reduction <add>, %38, %cst_17 [0] : vector<16x128xf32> to vector<128xf32>
    %40 = vector.shape_cast %39 : vector<128xf32> to vector<1x128xf32>
    %cst_18 = arith.constant 1.000000e-01 : f32
    %41 = vector.broadcast %cst_18 : f32 to vector<1x128xf32>
    %42 = arith.mulf %40, %41 : vector<1x128xf32>
    %43 = arith.mulf %38, %38 : vector<16x128xf32>
    %cst_19 = arith.constant dense<0.000000e+00> : vector<128xf32>
    %44 = vector.multi_reduction <add>, %43, %cst_19 [0] : vector<16x128xf32> to vector<128xf32>
    %45 = vector.shape_cast %44 : vector<128xf32> to vector<1x128xf32>
    %cst_20 = arith.constant 1.000000e-01 : f32
    %46 = vector.broadcast %cst_20 : f32 to vector<1x128xf32>
    %47 = arith.mulf %45, %46 : vector<1x128xf32>
    %48 = arith.mulf %42, %42 : vector<1x128xf32>
    %49 = arith.subf %47, %48 : vector<1x128xf32>
    %cst_21 = arith.constant 0.000000e+00 : f32
    %50 = vector.broadcast %cst_21 : f32 to vector<1x128xf32>
    %51 = arith.maximumf %49, %50 : vector<1x128xf32>
    %c0_22 = arith.constant 0 : index
    %c0_23 = arith.constant 0 : index
    %52 = vector.load %arg5[%c0_22, %c0_23] : memref<1x128xf32, #tpu.memory_space<vmem>>, vector<1x128xf32>
    %cst_24 = arith.constant 9.99999974E-6 : f32
    %53 = vector.broadcast %cst_24 : f32 to vector<1x128xf32>
    %54 = arith.addf %51, %53 : vector<1x128xf32>
    %55 = math.rsqrt %54 : vector<1x128xf32>
    %56 = arith.mulf %52, %55 : vector<1x128xf32>
    %c0_25 = arith.constant 0 : index
    %c0_26 = arith.constant 0 : index
    %57 = vector.load %arg7[%c0_25, %c0_26] : memref<1x128xf32, #tpu.memory_space<vmem>>, vector<1x128xf32>
    %58 = arith.mulf %42, %56 : vector<1x128xf32>
    %59 = arith.subf %57, %58 : vector<1x128xf32>
    %60 = vector.broadcast %56 : vector<1x128xf32> to vector<16x128xf32>
    %61 = arith.mulf %38, %60 : vector<16x128xf32>
    %62 = vector.broadcast %59 : vector<1x128xf32> to vector<16x128xf32>
    %63 = arith.addf %61, %62 : vector<16x128xf32>
    %cst_27 = arith.constant 0.000000e+00 : f32
    %64 = vector.broadcast %cst_27 : f32 to vector<16x128xf32>
    %65 = arith.maximumf %63, %64 : vector<16x128xf32>
    %66 = arith.mulf %65, %5 : vector<16x128xf32>
    %67 = arith.truncf %66 : vector<16x128xf32> to vector<16x128xbf16>
    %c0_28 = arith.constant 0 : index
    %c0_29 = arith.constant 0 : index
    %68 = vector.load %arg3[%c0_28, %c0_29] : memref<128x128xbf16, #tpu.memory_space<vmem>>, vector<128x128xbf16>
    %cst_30 = arith.constant dense<0.000000e+00> : vector<16x128xf32>
    %69 = tpu.matmul %67, %68, %cst_30 {dimension_numbers = #tpu.dot_dimension_numbers<[1], [0], [0], [1], [0, 0, 1, 1], [], []>} : vector<16x128xbf16>, vector<128x128xbf16>, vector<16x128xf32> -> vector<16x128xf32>
    %c0_31 = arith.constant 0 : index
    %c0_32 = arith.constant 0 : index
    %70 = vector.load %arg8[%c0_31, %c0_32] : memref<1x128xf32, #tpu.memory_space<vmem>>, vector<1x128xf32>
    %71 = vector.broadcast %70 : vector<1x128xf32> to vector<16x128xf32>
    %72 = arith.addf %69, %71 : vector<16x128xf32>
    %c0_33 = arith.constant 0 : index
    %c0_34 = arith.constant 0 : index
    %73 = vector.load %arg9[%c0_33, %c0_34] : memref<16x128xf32, #tpu.memory_space<vmem>>, vector<16x128xf32>
    tpu.vector_store %arg9[%c0_33, %c0_34], %72 {strides = array<i32>} : memref<16x128xf32, #tpu.memory_space<vmem>>, vector<16x128xf32>,
    return
  }
}

</mosaic_0001>

<bundles_post_ra>
// kernel: mlp_forward.1
= control target key start
LH: loop header
LB: loop body
LE: loop exit
PB: predicated region body
PF: predicated region fallthrough
CT: control target
= control target key end

     0   :  { %v621_v0 = vmov 0.0   ;;  %vm622_vm0 = vmmov 0   ;;  %v35_v44 = vlaneseq  ;;  %s810_s1 = inlined_call_operand.vmem [shape: bf16[128,128], index: 1, kind: input, shape index: {}]   ;;  %s811_s0 = inlined_call_operand.vmem [shape: bf16[16,128], index: 0, kind: input, shape index: {}]   ;;  %s812_s2 = inlined_call_operand.vmem [shape: bf16[128,128], index: 2, kind: input, shape index: {}]   ;;  %s813_s4 = inlined_call_operand.vmem [shape: f32[1,128], index: 4, kind: input, shape index: {}]   ;;  %s814_s6 = inlined_call_operand.vmem [shape: f32[1,128], index: 6, kind: input, shape index: {}]   ;;  %s815_s3 = inlined_call_operand.vmem [shape: bf16[128,128], index: 3, kind: input, shape index: {}]   ;;  %s816_s5 = inlined_call_operand.vmem [shape: f32[1,128], index: 5, kind: input, shape index: {}]   ;;  %s817_s7 = inlined_call_operand.vmem [shape: f32[1,128], index: 7, kind: input, shape index: {}]   ;;  %s818_s8 = inlined_call_operand.vmem [shape: f32[1,128], index: 8, kind: input, shape index: {}]   ;;  %s819_s9 = inlined_call_operand.vmem [shape: f32[16,128], index: 9, kind: output, shape index: {}]  }
   0x1   :  { %530 = vmatprep.subr.bf16.mxu0 %v621_v0  ;;  %v592_v1 = vld [vmem:[%s810_s1 + $0x38] sm:$0xff]   ;;  %546 = vmatprep.mubr.msk.bf16.mxu0 %vm622_vm0, %v621_v0  ;;  %v593_v2 = vld [vmem:[%s810_s1 + $0x30] sm:$0xff]   ;;  %v594_v3 = vld [vmem:[%s810_s1 + $0x28] sm:$0xff]  }
   0x2   :  { %550 = vmatprep.subr.bf16.mxu1 %v621_v0  ;;  %566 = vmatprep.mubr.msk.bf16.mxu1 %vm622_vm0, %v621_v0  ;;  %v595_v4 = vld [vmem:[%s810_s1 + $0x20] sm:$0xff]   ;;  %v596_v5 = vld [vmem:[%s810_s1 + $0x18] sm:$0xff]   ;;  %v597_v6 = vld [vmem:[%s810_s1 + $0x10] sm:$0xff]   ;;  %v36_v45 = vshrl.u32 %v35_v44, 7 }
   0x3   :  { %531 = vmatpush3.bf16.msra.mxu0 %v592_v1  ;;  %v598_v7 = vld [vmem:[%s810_s1 + $0x8] sm:$0xff]   ;;  %v599_v8 = vld [vmem:[%s810_s1] sm:$0xff]   ;;  %v601_v10 = vld [vmem:[%s812_s2 + $0x38] sm:$0xff]  }
   0x4   :  { %532 = vmatprep.subr.bf16.mxu0 %v621_v0  ;;  %v600_v9 = vld [vmem:[%s811_s0] sm:$0xff]   ;;  %551 = vmatpush3.bf16.msra.mxu1 %v601_v10  ;;  %v602_v11 = vld [vmem:[%s812_s2 + $0x30] sm:$0xff]   ;;  %v603_v12 = vld [vmem:[%s812_s2 + $0x28] sm:$0xff]   ;;  %v750_v47 = vsub.s32 0, %v36_v45  ;;  %v37_v53 = vadd.s32 8, %v36_v45 }
   0x5   :  { %552 = vmatprep.subr.bf16.mxu1 %v621_v0  ;;  %v604_v13 = vld [vmem:[%s812_s2 + $0x20] sm:$0xff]   ;;  %v605_v14 = vld [vmem:[%s812_s2 + $0x18] sm:$0xff]   ;;  %v606_v15 = vld [vmem:[%s812_s2 + $0x10] sm:$0xff]  }
   0x6   :  { %v607_v16 = vld [vmem:[%s812_s2 + $0x8] sm:$0xff]   ;;  %v608_v17 = vld [vmem:[%s812_s2] sm:$0xff]   ;;  %vm39_vm1 = vcmp.lt.s32.totalorder %v37_v53, 10 }
   0x7   :  { %533 = vmatpush3.bf16.msra.mxu0 %v593_v2  ;;  %v176_v46 = vld [vmem:[%s813_s4] sm:$0x1]  ;;  %v758_v60 = vsel %vm39_vm1, 1.0, %v621_v0  ;;  %v609_v2 = vld [vmem:[%s815_s3 + $0x38] sm:$0xff]  }
   0x8   :  { %534 = vmatprep.subr.bf16.mxu0 %v621_v0  ;;  %553 = vmatpush3.bf16.msra.mxu1 %v602_v11  ;;  %v180_v50 = vld [vmem:[%s814_s6] sm:$0x1] }
   0x9   :  { %554 = vmatprep.subr.bf16.mxu1 %v621_v0 }
   0xb   :  { %535 = vmatpush3.bf16.msra.mxu0 %v594_v3  ;;  %v610_v3 = vld [vmem:[%s815_s3 + $0x30] sm:$0xff]  }
   0xc   :  { %536 = vmatprep.subr.bf16.mxu0 %v621_v0  ;;  %555 = vmatpush3.bf16.msra.mxu1 %v603_v12 }
   0xd   :  { %556 = vmatprep.subr.bf16.mxu1 %v621_v0 }
   0xf   :  { %537 = vmatpush3.bf16.msra.mxu0 %v595_v4  ;;  %v611_v4 = vld [vmem:[%s815_s3 + $0x28] sm:$0xff]  }
  0x10   :  { %538 = vmatprep.subr.bf16.mxu0 %v621_v0  ;;  %557 = vmatpush3.bf16.msra.mxu1 %v604_v13 }
  0x11   :  { %558 = vmatprep.subr.bf16.mxu1 %v621_v0 }
  0x13   :  { %539 = vmatpush3.bf16.msra.mxu0 %v596_v5  ;;  %v612_v5 = vld [vmem:[%s815_s3 + $0x20] sm:$0xff]  }
  0x14   :  { %540 = vmatprep.subr.bf16.mxu0 %v621_v0  ;;  %559 = vmatpush3.bf16.msra.mxu1 %v605_v14 }
  0x15   :  { %560 = vmatprep.subr.bf16.mxu1 %v621_v0 }
  0x17   :  { %541 = vmatpush3.bf16.msra.mxu0 %v597_v6  ;;  %v613_v6 = vld [vmem:[%s815_s3 + $0x18] sm:$0xff]  }
  0x18   :  { %542 = vmatprep.subr.bf16.mxu0 %v621_v0  ;;  %561 = vmatpush3.bf16.msra.mxu1 %v606_v15 }
  0x19   :  { %562 = vmatprep.subr.bf16.mxu1 %v621_v0 }
  0x1b   :  { %543 = vmatpush3.bf16.msra.mxu0 %v598_v7  ;;  %v614_v7 = vld [vmem:[%s815_s3 + $0x10] sm:$0xff]  }
  0x1c   :  { %544 = vmatprep.subr.bf16.mxu0 %v621_v0  ;;  %563 = vmatpush3.bf16.msra.mxu1 %v607_v16 }
  0x1d   :  { %564 = vmatprep.subr.bf16.mxu1 %v621_v0 }
  0x1f   :  { %545 = vmatpush3.bf16.msra.mxu0 %v599_v8  ;;  %v615_v8 = vld [vmem:[%s815_s3 + $0x8] sm:$0xff]  }
  0x20   :  { %570 = vmatprep.subr.bf16.mxu0 %v621_v0  ;;  %565 = vmatpush3.bf16.msra.mxu1 %v608_v17 }
  0x22   :  { %547 = vmatmul.mubr.bf16.vlgmr.msra.gmra.mxu0 %v600_v9  ;;  %v616_v9 = vld [vmem:[%s815_s3] sm:$0xff]  }
  0x23   :  { %586 = vmatprep.mubr.msk.bf16.mxu0 %vm622_vm0, %v621_v0  ;;  %571 = vmatpush3.bf16.msra.mxu0 %v609_v2 }
  0x24   :  { %572 = vmatprep.subr.bf16.mxu0 %v621_v0 }
  0x27   :  { %573 = vmatpush3.bf16.msra.mxu0 %v610_v3 }
  0x28   :  { %574 = vmatprep.subr.bf16.mxu0 %v621_v0 }
  0x2b   :  { %575 = vmatpush3.bf16.msra.mxu0 %v611_v4 }
  0x2c   :  { %576 = vmatprep.subr.bf16.mxu0 %v621_v0 }
  0x2f   :  { %577 = vmatpush3.bf16.msra.mxu0 %v612_v5 }
  0x30   :  { %578 = vmatprep.subr.bf16.mxu0 %v621_v0 }
  0x33   :  { %579 = vmatpush3.bf16.msra.mxu0 %v613_v6 }
  0x34   :  { %580 = vmatprep.subr.bf16.mxu0 %v621_v0 }
  0x37   :  { %581 = vmatpush3.bf16.msra.mxu0 %v614_v7 }
  0x38   :  { %582 = vmatprep.subr.bf16.mxu0 %v621_v0 }
  0x3b   :  { %583 = vmatpush3.bf16.msra.mxu0 %v615_v8 }
  0x3c   :  { %584 = vmatprep.subr.bf16.mxu0 %v621_v0 }
  0x3f   :  { %585 = vmatpush3.bf16.msra.mxu0 %v616_v9 }
  0xe2   :  { %v148_v18 = vpop.f32.mrf.mxu0 }
  0xe3   :  { %v163_v21 = vmul.f32 %v148_v18, %v148_v18 }
  0xe4   :  { %v548_v19 = vpop.f32.mrf.mxu0 }
  0xe6   :  { %v151_v20 = vpop.f32.mrf.mxu0 }
  0xe7   :  { %v155_v22 = vadd.f32 %v151_v20, %v148_v18  ;;  %v164_v23 = vmul.f32 %v151_v20, %v151_v20 }
  0xe8   :  { %v549_v24 = vpop.f32.mrf.mxu0 }
  0xe9   :  { %v156_v25 = vrot.slane %v155_v22, 4  ;;  %v165_v26 = vadd.f32 %v164_v23, %v163_v21 }
  0xeb   :  { %v157_v27 = vadd.f32 %v156_v25, %v155_v22  ;;  %v166_v28 = vrot.slane %v165_v26, 4 }
  0xed   :  { %v158_v29 = vrot.slane %v157_v27, 2  ;;  %v167_v30 = vadd.f32 %v166_v28, %v165_v26 }
  0xef   :  { %v159_v31 = vadd.f32 %v158_v29, %v157_v27  ;;  %v168_v32 = vrot.slane %v167_v30, 2 }
  0xf1   :  { %v160_v33 = vrot.slane %v159_v31, 1  ;;  %v169_v34 = vadd.f32 %v168_v32, %v167_v30 }
  0xf3   :  { %v161_v35 = vadd.f32 %v160_v33, %v159_v31  ;;  %v170_v36 = vrot.slane %v169_v34, 1 }
  0xf5   :  { %v162_v37 = vmul.f32 0.1, %v161_v35  ;;  %v171_v38 = vadd.f32 %v170_v36, %v169_v34  ;;  %v330_v35 = vld [vmem:[%s816_s5] sm:$0x1] }
  0xf7   :  { %v172_v39 = vmul.f32 0.1, %v171_v38  ;;  %v173_v40 = vmul.f32 %v162_v37, %v162_v37  ;;  %v334_v38 = vld [vmem:[%s817_s7] sm:$0x1] }
  0xf9   :  { %v174_v41 = vsub.f32 %v172_v39, %v173_v40 }
  0xfb   :  { %v175_v42 = vmax.f32 %v174_v41, 0.0 }
  0xfd   :  { %v177_v43 = vadd.f32 1e-05, %v175_v42 }
  0xff   :  { %617 = vrsqrt.f32 %v177_v43 }
 0x10c   :  { %v618_v48 = vpop.eup %617 }
 0x10d   :  { %v179_v49 = vmul.f32 %v618_v48, %v176_v46 }
 0x10f   :  { %v181_v51 = vmul.f32 %v179_v49, %v162_v37  ;;  %v187_v52 = vrot.slane %v179_v49, %v750_v47 }
 0x111   :  { %v182_v54 = vsub.f32 %v180_v50, %v181_v51  ;;  %v189_v55 = vmul.f32 %v187_v52, %v148_v18  ;;  %v190_v56 = vmul.f32 %v187_v52, %v151_v20  ;;  %v494_v52 = vld [vmem:[%s818_s8] ss:$0 sm:$0xff] }
 0x113   :  { %v195_v57 = vrot.slane %v182_v54, %v750_v47 }
 0x115   :  { %v198_v58 = vadd.f32 %v195_v57, %v190_v56  ;;  %v197_v59 = vadd.f32 %v195_v57, %v189_v55 }
 0x117   :  { %v200_v61 = vmax.f32 %v198_v58, 0.0  ;;  %v199_v62 = vmax.f32 %v197_v59, 0.0 }
 0x119   :  { %v202_v63 = vmul.f32 %v758_v60, %v200_v61 }
 0x11b   :  { %v203_v1 = vpack.c.bf16 %v202_v63, %v199_v62 }
 0x11d   :  { %567 = vmatmul.mubr.bf16.vlgmr.msra.gmra.mxu1 %v203_v1 }
 0x1dd   :  { %v302_v10 = vpop.f32.mrf.mxu1 }
 0x1de   :  { %v317_v13 = vmul.f32 %v302_v10, %v302_v10 }
 0x1df   :  { %v568_v11 = vpop.f32.mrf.mxu1 }
 0x1e1   :  { %v305_v12 = vpop.f32.mrf.mxu1 }
 0x1e2   :  { %v309_v14 = vadd.f32 %v305_v12, %v302_v10  ;;  %v318_v15 = vmul.f32 %v305_v12, %v305_v12 }
 0x1e3   :  { %v569_v16 = vpop.f32.mrf.mxu1 }
 0x1e4   :  { %v310_v17 = vrot.slane %v309_v14, 4  ;;  %v319_v18 = vadd.f32 %v318_v15, %v317_v13 }
 0x1e6   :  { %v311_v19 = vadd.f32 %v310_v17, %v309_v14  ;;  %v320_v20 = vrot.slane %v319_v18, 4 }
 0x1e8   :  { %v312_v21 = vrot.slane %v311_v19, 2  ;;  %v321_v22 = vadd.f32 %v320_v20, %v319_v18 }
 0x1ea   :  { %v313_v23 = vadd.f32 %v312_v21, %v311_v19  ;;  %v322_v0 = vrot.slane %v321_v22, 2 }
 0x1ec   :  { %v314_v24 = vrot.slane %v313_v23, 1  ;;  %v323_v25 = vadd.f32 %v322_v0, %v321_v22 }
 0x1ee   :  { %v315_v26 = vadd.f32 %v314_v24, %v313_v23  ;;  %v324_v27 = vrot.slane %v323_v25, 1 }
 0x1f0   :  { %v316_v28 = vmul.f32 0.1, %v315_v26  ;;  %v325_v29 = vadd.f32 %v324_v27, %v323_v25 }
 0x1f2   :  { %v326_v30 = vmul.f32 0.1, %v325_v29  ;;  %v327_v31 = vmul.f32 %v316_v28, %v316_v28 }
 0x1f4   :  { %v328_v32 = vsub.f32 %v326_v30, %v327_v31 }
 0x1f6   :  { %v329_v33 = vmax.f32 %v328_v32, 0.0 }
 0x1f8   :  { %v331_v34 = vadd.f32 1e-05, %v329_v33 }
 0x1fa   :  { %619 = vrsqrt.f32 %v331_v34 }
 0x207   :  { %v620_v36 = vpop.eup %619 }
 0x208   :  { %v333_v37 = vmul.f32 %v620_v36, %v330_v35 }
 0x20a   :  { %v335_v39 = vmul.f32 %v333_v37, %v316_v28  ;;  %v341_v40 = vrot.slane %v333_v37, %v750_v47 }
 0x20c   :  { %v336_v41 = vsub.f32 %v334_v38, %v335_v39  ;;  %v343_v42 = vmul.f32 %v341_v40, %v302_v10  ;;  %v344_v43 = vmul.f32 %v341_v40, %v305_v12 }
 0x20e   :  { %v349_v44 = vrot.slane %v336_v41, %v750_v47 }
 0x210   :  { %v351_v45 = vadd.f32 %v349_v44, %v343_v42  ;;  %v352_v46 = vadd.f32 %v349_v44, %v344_v43 }
 0x212   :  { %v354_v48 = vmax.f32 %v352_v46, 0.0  ;;  %v353_v50 = vmax.f32 %v351_v45, 0.0 }
 0x214   :  { %v356_v49 = vmul.f32 %v758_v60, %v354_v48 }
 0x216   :  { %v357_v51 = vpack.c.bf16 %v356_v49, %v353_v50 }
 0x218   :  { %587 = vmatmul.mubr.bf16.vlgmr.msra.gmra.mxu0 %v357_v51 }
 0x2d8   :  { %v463_v53 = vpop.f32.mrf.mxu0 }
 0x2d9   :  { %v464_v54 = vadd.f32 %v494_v52, %v463_v53 }
 0x2da   :  { %v588_v55 = vpop.f32.mrf.mxu0 }
 0x2db   :  { %470 = vst [vmem:[%s819_s9] sm:$0xff] %v464_v54 }
 0x2dc   :  { %v466_v47 = vpop.f32.mrf.mxu0 }
 0x2dd   :  { %v467_v56 = vadd.f32 %v494_v52, %v466_v47 }
 0x2de   :  { %v589_v57 = vpop.f32.mrf.mxu0 }
 0x2df   :  { %471 = vst [vmem:[%s819_s9 + $0x8] sm:$0xff] %v467_v56 }

</bundles_post_ra>
